<compile_context>
chip_gen: v7x
topology: tpu7x:2x2x1
jax: 0.10.0
libtpu: 0.0.40
codegen_flags: <defaults>
</compile_context>

<pallas_src>
import functools
import math

import jax
import jax.numpy as jnp
import numpy as np
from jax.experimental import pallas as pl
from jax.experimental.pallas import tpu as pltpu

D_MODEL = 32        # input_size
MAX_LEN = 2500      # module default
LANES = 128         # TPU lane width
POS_BUCKET = 128    # sequence-length bucket (multiple of 32 -> 8-sublane legal)


def make_positional_encoding_buffer(input_size: int = D_MODEL,
                                    max_len: int = MAX_LEN) -> jax.Array:
    """Equivalent of PositionalEncoding.__init__ (the registered `pe` buffer),
    returned in a lane-dense (max_len // (128//D), 128) layout.  This is a pure
    row-major reshape of the (max_len, D) table, so row r holds positions
    r*(128//D) .. r*(128//D)+(128//D)-1."""
    assert LANES % input_size == 0, "lane-dense layout needs D to divide 128"
    pos_per_row = LANES // input_size
    assert max_len % pos_per_row == 0, "max_len must be divisible by 128//D"

    positions = jnp.arange(max_len, dtype=jnp.float32)[:, None]              # (L, 1)
    denominator = jnp.exp(
        jnp.arange(0, input_size, 2, dtype=jnp.float32)
        * -(math.log(10000.0) / input_size))                                 # (D/2,)
    angles = positions * denominator                                         # (L, D/2)
    pe = jnp.zeros((max_len, input_size), dtype=jnp.float32)
    pe = pe.at[:, 0::2].set(jnp.sin(angles))
    pe = pe.at[:, 1::2].set(jnp.cos(angles))
    return pe.reshape(max_len // pos_per_row, LANES)                         # (625, 128)


def _pe_copy_kernel(pe_ref, out_ref):
    # forward(x) = pe[:, :T]: the BlockSpec already windows the lane-dense
    # buffer to the first `rows` rows, so the body is one full-width block copy
    # (unmasked 128-lane vld/vst).
    out_ref[...] = pe_ref[...]


@functools.lru_cache(maxsize=None)
def _pe_slice_call(rows: int, dtype_name: str):
    """One cached pallas_call per (rows, dtype) bucket — no per-length recompiles."""
    dtype = jnp.dtype(dtype_name)
    return pl.pallas_call(
        _pe_copy_kernel,
        out_shape=jax.ShapeDtypeStruct((rows, LANES), dtype),
        grid=(1,),
        # `rows` is either a multiple of 8 (bucketed) or the full first dim,
        # and the last dim is exactly 128 -> legal, lane-dense block.
        in_specs=[pl.BlockSpec((rows, LANES), lambda i: (0, 0))],
        out_specs=pl.BlockSpec((rows, LANES), lambda i: (0, 0)),
        compiler_params=pltpu.CompilerParams(
            dimension_semantics=("arbitrary",)),
    )


def positional_encoding_forward(x: jax.Array, pe_dense: jax.Array,
                                input_size: int = D_MODEL) -> jax.Array:
    """Pallas implementation of PositionalEncoding.forward -> (1, T, D)."""
    total_rows, lanes = pe_dense.shape
    pos_per_row = lanes // input_size
    max_len = total_rows * pos_per_row
    t = x.shape[1]
    if t > max_len:
        raise ValueError(f"sequence length {t} exceeds max_len {max_len}")

    # Bucket T so one compiled kernel serves every length in the bucket.
    t_bucket = min(max_len, pl.cdiv(t, POS_BUCKET) * POS_BUCKET)
    rows = t_bucket // pos_per_row            # multiple of 32, or full 625

    out_dense = _pe_slice_call(rows, str(pe_dense.dtype))(pe_dense)  # (rows, 128)

    # Contiguous (free) reshape back to the module's logical layout, then keep
    # exactly the T rows forward() returns.
    out = out_dense.reshape(1, t_bucket, input_size)
    return out[:, :t, :]


if __name__ == "__main__":
    B, T = 2, 8
    key = jax.random.PRNGKey(0)
    # x's values are never used by forward (only its length), matching torch.
    x = jax.random.normal(key, (B, T, D_MODEL), jnp.float32)

    pe_dense = make_positional_encoding_buffer(D_MODEL, MAX_LEN)  # register_buffer equiv.
    out = jax.block_until_ready(positional_encoding_forward(x, pe_dense))

    # --- validation ---------------------------------------------------------
    assert out.shape == (1, T, D_MODEL)
    assert out.dtype == jnp.float32

    # numpy reference matching the torch formula
    den_np = np.exp(np.arange(0, D_MODEL, 2, dtype=np.float32)
                    * -(math.log(10000.0) / D_MODEL))

    def ref_pe(t):
        pos = np.arange(t, dtype=np.float32)[:, None]
        r = np.zeros((t, D_MODEL), np.float32)
        r[:, 0::2] = np.sin(pos * den_np)
        r[:, 1::2] = np.cos(pos * den_np)
        return r

    assert np.allclose(np.asarray(out[0]), ref_pe(T), atol=1e-5, rtol=1e-5)

    # A different length in the same bucket reuses the exact same compiled kernel.
    T2 = 50
    x2 = jnp.zeros((B, T2, D_MODEL), jnp.float32)
    out2 = jax.block_until_ready(positional_encoding_forward(x2, pe_dense))
    assert out2.shape == (1, T2, D_MODEL)
    assert np.allclose(np.asarray(out2[0]), ref_pe(T2), atol=1e-5, rtol=1e-5)

    print("KERNEL_OK")
</pallas_src>

<mosaic_0001>
module attributes {stable_mosaic.version = 11 : i64} {
  func.func @_pe_copy_kernel(%arg0: i32, %arg1: memref<32x128xf32, #tpu.memory_space<vmem>>, %arg2: memref<32x128xf32, #tpu.memory_space<vmem>>) attributes {dimension_semantics = [#tpu.dimension_semantics<arbitrary>], iteration_bounds = array<i64: 1>, scalar_prefetch = 0 : i64, scratch_operands = 0 : i64, tpu.core_type = #tpu.core_type<tc>, window_params = [{transform_indices = @transform_0, window_bounds = array<i64: 32, 128>}, {pipeline_mode = #tpu.pipeline_mode<synchronous>, transform_indices = @transform_1, window_bounds = array<i64: 32, 128>}]} {
    %c0 = arith.constant 0 : index
    %c0_0 = arith.constant 0 : index
    %0 = vector.load %arg1[%c0, %c0_0] : memref<32x128xf32, #tpu.memory_space<vmem>>, vector<32x128xf32>
    %c0_1 = arith.constant 0 : index
    %c0_2 = arith.constant 0 : index
    %1 = vector.load %arg2[%c0_1, %c0_2] : memref<32x128xf32, #tpu.memory_space<vmem>>, vector<32x128xf32>
    tpu.vector_store %arg2[%c0_1, %c0_2], %0 {strides = array<i32>} : memref<32x128xf32, #tpu.memory_space<vmem>>, vector<32x128xf32>,
    return
  }
  func.func @transform_0(%arg0: i32) -> (i32, i32) {
    %c0_i32 = arith.constant 0 : i32
    %c0_i32_0 = arith.constant 0 : i32
    %c0_i32_1 = arith.constant 0 : i32
    return %c0_i32, %c0_i32_0 : i32, i32
  }
  func.func @transform_1(%arg0: i32) -> (i32, i32) {
    %c0_i32 = arith.constant 0 : i32
    %c0_i32_0 = arith.constant 0 : i32
    %c0_i32_1 = arith.constant 0 : i32
    return %c0_i32, %c0_i32_0 : i32, i32
  }
}

</mosaic_0001>

<bundles_post_ra>
// kernel: tpu_custom_call.1
= control target key start
LH: loop header
LB: loop body
LE: loop exit
PB: predicated region body
PF: predicated region fallthrough
CT: control target
= control target key end

     0   :  { %6 = vsyncpa [#allocation3], 0  ;;  %s147_s0 = inlined_call_operand.hbm [shape: f32[625,128], index: 0, kind: input, shape index: {}]   ;;  %s148_s1 = inlined_call_operand.hbm [shape: f32[32,128], index: 1, kind: output, shape index: {}]  }
   0x1   :  { %7 = vsyncpa [#allocation4], 0  ;;  %s100_s6 = smov [#allocation2]   ;;  %s52_s10 = scalar_lea.hbm %s147_s0, 512 }
   0x2   :  { %s13_s7 = sshll.u32 %s100_s6, 4  ;;  %p53_p0 = scmp.ne.s32.totalorder %s147_s0, %s52_s10  ;;  %s14_s7 = int_to_ptr.vmem [resolvable:$true] %s13_s7 }
   0x3   :  { %s54_s15 = scalar_lea.hbm %s147_s0, 10112  ;;  %p56_p2 = scmp.lt.u32.totalorder %s52_s10, %s147_s0 }
   0x4   :  { %p55_p1 = scmp.lt.u32.totalorder %s54_s15, %s52_s10 }
   0x6   :  { %p57_p3 = por %p56_p2, %p55_p1 }
   0x8   :  { %p58_p4 = pnand %p57_p3, %p53_p0 }
   0xa   :  { %61 = shalt.err (!%p58_p4)
}
   0xb   :  { %s62_s18 = scalar_lea.vmem %s14_s7, 512  ;;  %p67_p6 = scmp.lt.s32.totalorder %s14_s7, %s14_s7 }
   0xc   :  { %p63_p5 = scmp.ne.s32.totalorder %s14_s7, %s62_s18  ;;  %p68_p7 = scmp.lt.s32.totalorder %s62_s18, %s62_s18 }
   0xe   :  { %p69_p8 = por %p68_p7, %p67_p6 }
  0x10   :  { %p70_p9 = pnand %p69_p8, %p63_p5 }
  0x12   :  { %73 = shalt.err (!%p70_p9)
}
  0x13   :  { %s101_s19 = smov 128   ;;  %s102_s20 = smov 8  }
  0x14   :  { %19 = dma.hbm_to_vmem [thread:$0]  %s147_s0, 512, %s14_s7, [#allocation3], %s101_s19, %s101_s19, %s102_s20  }
  0x15   :  { %96 = dma.done.wait [#allocation3], 512  }
  0x16   :  { %97 = vsyncadd [#allocation3], 4294966784  ;;  %s103_s23 = smov [#allocation5]   ;;  %v23_v0 = vld [vmem:[#allocation2] sm:$0xff]  ;;  %v24_v1 = vld [vmem:[#allocation2 + $0x8] sm:$0xff] }
  0x17   :  { %s36_s24 = sshll.u32 %s103_s23, 4  ;;  %v25_v2 = vld [vmem:[#allocation2 + $0x10] sm:$0xff]  ;;  %27 = vst [vmem:[#allocation5] sm:$0xff] %v23_v0  ;;  %28 = vst [vmem:[#allocation5 + $0x8] sm:$0xff] %v24_v1  ;;  %v26_v3 = vld [vmem:[#allocation2 + $0x18] sm:$0xff]  ;;  %s37_s24 = int_to_ptr.vmem [resolvable:$true] %s36_s24 }
  0x18   :  { %29 = vst [vmem:[#allocation5 + $0x10] sm:$0xff] %v25_v2  ;;  %30 = vst [vmem:[#allocation5 + $0x18] sm:$0xff] %v26_v3  ;;  %s74_s25 = scalar_lea.vmem %s37_s24, 512  ;;  %p79_p11 = scmp.lt.s32.totalorder %s37_s24, %s37_s24 }
  0x19   :  { %p75_p10 = scmp.ne.s32.totalorder %s37_s24, %s74_s25  ;;  %p80_p12 = scmp.lt.s32.totalorder %s74_s25, %s74_s25 }
  0x1b   :  { %p81_p13 = por %p80_p12, %p79_p11 }
  0x1d   :  { %p82_p0 = pnand %p81_p13, %p75_p10 }
  0x1f   :  { %85 = shalt.err (!%p82_p0)
}
  0x20   :  { %s86_s27 = scalar_lea.hbm %s148_s1, 512 }
  0x21   :  { %p87_p1 = scmp.ne.s32.totalorder %s148_s1, %s86_s27  ;;  %p90_p2 = scmp.lt.u32.totalorder %s86_s27, %s148_s1 }
  0x23   :  { %p92_p3 = pnand %p90_p2, %p87_p1 }
  0x25   :  { %95 = shalt.err (!%p92_p3)
}
  0x26   :  { %42 = dma.vmem_to_hbm [thread:$0]  %s37_s24, 512, %s148_s1, [#allocation4], %s101_s19, %s101_s19, %s102_s20  }
  0x27   :  { %98 = dma.done.wait [#allocation4], 512  }
  0x28   :  { %99 = vsyncadd [#allocation4], 4294966784 }
  0x29   :  { %46 = vsyncpa [#allocation3], 1 }
  0x2a   :  { %47 = vsyncpa [#allocation4], 1 }

</bundles_post_ra>
